<compile_context>
chip_gen: v7x
topology: tpu7x:2x2x1
jax: 0.10.0
libtpu: 0.0.40
codegen_flags: <defaults>
</compile_context>

<pallas_src>
import math

import jax
import jax.numpy as jnp
from jax.experimental import pallas as pl
from jax.experimental.pallas import tpu as pltpu


def _copy_kernel(x_ref, o_ref):
    # Identity: copy the current VMEM tile of the input to the output.
    o_ref[...] = x_ref[...]


_LANE_CANDIDATES = (1024, 512, 256, 128)


def _pick_lanes(n):
    """Largest lane width (multiple of 128, <= 1024) that divides n exactly."""
    for lanes in _LANE_CANDIDATES:
        if n % lanes == 0:
            return lanes
    return None


def _block_config():
    """(target_block_bytes, vmem_limit_bytes | None), tuned per TPU generation."""
    target = 2 * 1024 * 1024          # safe everywhere (v5e scoped VMEM = 16 MiB)
    vmem_limit = None
    try:
        info = pltpu.get_tpu_info()
        vmem_cap = getattr(info, "vmem_capacity_bytes", None)
        if vmem_cap is not None and int(vmem_cap) <= 96 * 1024 * 1024:
            # v7x-class chip: only 64 MiB VMEM per TensorCore but ~2.3x the HBM
            # bandwidth of v6e -> bigger blocks keep the ~0.35 us/step overhead
            # <10%; raise the scoped-VMEM limit to cover the double-buffered
            # input + output blocks (4 x 4 MiB = 16 MiB working set).
            target = 4 * 1024 * 1024
            vmem_limit = 40 * 1024 * 1024
    except Exception:
        pass  # unknown generation: keep the universally safe defaults
    return target, vmem_limit


def _choose_tile_rows(rows, bytes_per_row, sub, target_bytes):
    """Tile row count: sublane-aligned, <= ~target_bytes per block, and >= 2
    roughly equal grid steps when each step would still be >= ~1 MiB."""
    max_tile_rows = max(sub, (target_bytes // bytes_per_row) // sub * sub)
    if rows > max_tile_rows:
        return max_tile_rows                       # many blocks; last one overhangs
    if rows % sub != 0:
        return rows                                # single full-dim block
    min_split_rows = max(sub, (1 << 20) // bytes_per_row)   # ~1 MiB per step
    if rows >= 2 * min_split_rows:
        # Two roughly equal "parallel" steps: feeds both v7x TensorCores; the
        # one extra ~0.35 us step is noise at >= 1 MiB per step on v5e/v6e.
        return max(sub, pl.cdiv(rows // 2, sub) * sub)
    return rows


def _pallas_identity_copy(x):
    """HBM -> VMEM -> HBM copy of `x` through a Pallas kernel (fresh buffer)."""
    orig_shape = x.shape
    dtype = x.dtype
    n = x.size
    if n == 0:
        return x

    itemsize = jnp.dtype(dtype).itemsize
    target_bytes, vmem_limit = _block_config()
    cp_kwargs = dict(dimension_semantics=("parallel",))
    if vmem_limit is not None:
        cp_kwargs["vmem_limit_bytes"] = vmem_limit
    compiler_params = pltpu.CompilerParams(**cp_kwargs)
    cost = pl.CostEstimate(flops=0, transcendentals=0,
                           bytes_accessed=2 * n * itemsize)

    lanes = _pick_lanes(n)
    if lanes is not None:
        # Lane-dense path: metadata-only reshape to (rows, lanes); every store
        # is a full-width unmasked vst.  No padding anywhere; the last grid
        # block may overhang `rows` and Pallas masks the out-of-bounds rows.
        sub = {1: 32, 2: 16, 4: 8}.get(itemsize, 8)
        rows = n // lanes
        tile_rows = _choose_tile_rows(rows, lanes * itemsize, sub, target_bytes)
        out = pl.pallas_call(
            _copy_kernel,
            out_shape=jax.ShapeDtypeStruct((rows, lanes), dtype),
            grid=(pl.cdiv(rows, tile_rows),),
            in_specs=[pl.BlockSpec((tile_rows, lanes), lambda i: (i, 0))],
            out_specs=pl.BlockSpec((tile_rows, lanes), lambda i: (i, 0)),
            compiler_params=compiler_params,
            cost_estimate=cost,
        )(x.reshape(rows, lanes))
        return out.reshape(orig_shape)

    # Ragged path (element count not a multiple of 128): keep the natural
    # shape and block only the leading dim (trailing block dims equal the full
    # array dims, which satisfies the (8, 128) rule).  Slightly less efficient
    # stores, but no extra pad/slice HBM passes.
    x2 = x.reshape(1, -1) if x.ndim < 2 else x
    lead = x2.shape[0]
    trail = x2.shape[1:]
    trail_bytes = math.prod(trail) * itemsize
    if trail_bytes <= target_bytes:
        tile0 = max(1, min(lead, target_bytes // trail_bytes))
        block = (tile0,) + trail
        idx_map = lambda i: (i,) + (0,) * (x2.ndim - 1)
        out = pl.pallas_call(
            _copy_kernel,
            out_shape=jax.ShapeDtypeStruct(x2.shape, dtype),
            grid=(pl.cdiv(lead, tile0),),
            in_specs=[pl.BlockSpec(block, idx_map)],
            out_specs=pl.BlockSpec(block, idx_map),
            compiler_params=compiler_params,
            cost_estimate=cost,
        )(x2)
        return out.reshape(orig_shape)

    # Last resort (huge AND ragged, e.g. an enormous non-128-divisible trailing
    # dim): pad the flat vector up to a multiple of 128 lanes and reuse the
    # lane-dense path.  Only this rare branch pays the extra pad/slice passes.
    lanes = 128
    padded = pl.cdiv(n, lanes) * lanes
    flat = jnp.pad(x.reshape(-1), (0, padded - n))
    out = _pallas_identity_copy(flat)
    return out[:n].reshape(orig_shape)


def hyrax_loopback_forward(x, unused_linear_params=None, *, materialize=False):
    """Forward pass of HyraxLoopback.

    Matches the PyTorch module: `if isinstance(x, tuple): x, _ = x; return x`.
    By default this is a true zero-cost identity (no kernel, no HBM traffic).
    Set `materialize=True` to route the tensor through the Pallas copy kernel,
    producing a fresh output buffer (used for testing the kernel path).
    `unused_linear_params` mirrors the module's unused nn.Linear(1, 1).
    """
    if isinstance(x, tuple):
        x, _ = x
    x = jnp.asarray(x)
    if not materialize:
        return x
    return _pallas_identity_copy(x)


def init_unused_linear_params():
    """Deterministic init of the module's unused nn.Linear(1, 1) parameters.

    Never touched by forward (matches PyTorch semantics); present only so the
    module's parameter shapes are represented.
    """
    key = jax.random.PRNGKey(42)
    kw, kb = jax.random.split(key)
    # PyTorch Linear default init: U(-1/sqrt(in_features), 1/sqrt(in_features)),
    # in_features = 1 -> U(-1, 1).
    weight = jax.random.uniform(kw, (1, 1), jnp.float32, -1.0, 1.0)
    bias = jax.random.uniform(kb, (1,), jnp.float32, -1.0, 1.0)
    return {"weight": weight, "bias": bias}


if __name__ == "__main__":
    key = jax.random.PRNGKey(0)
    k1, k2, k3 = jax.random.split(key, 3)

    params = init_unused_linear_params()  # unused by forward, like in PyTorch

    # 1) Default path: zero-cost identity short-circuit (tuple input branch).
    x = jax.random.normal(k1, (2, 4, 16, 16), dtype=jnp.float32)
    y = jax.block_until_ready(hyrax_loopback_forward((x, None), params))
    assert y.shape == x.shape and y.dtype == x.dtype
    assert bool(jnp.array_equal(y, x))

    # 2) Pallas kernel path: 128-divisible size -> lane-dense copy, no pad/slice.
    y_k = jax.block_until_ready(
        hyrax_loopback_forward((x, None), params, materialize=True))
    assert y_k.shape == x.shape and y_k.dtype == x.dtype
    assert bool(jnp.array_equal(y_k, x))

    # 3) Pallas kernel path: ragged bf16 shape -> natural-shape blocks, no pad.
    x2 = jax.random.normal(k2, (3, 5, 7, 19), dtype=jnp.bfloat16)
    y2 = jax.block_until_ready(hyrax_loopback_forward(x2, params, materialize=True))
    assert y2.shape == x2.shape and y2.dtype == x2.dtype
    assert bool(jnp.array_equal(y2, x2))

    # 4) Larger multi-block copy (exercises the parallel grid / pipelining).
    x3 = jax.random.normal(k3, (8, 256, 512), dtype=jnp.float32)
    y3 = jax.block_until_ready(hyrax_loopback_forward(x3, params, materialize=True))
    assert y3.shape == x3.shape and y3.dtype == x3.dtype
    assert bool(jnp.array_equal(y3, x3))

    print("KERNEL_OK")
</pallas_src>

<mosaic_0001>
module attributes {stable_mosaic.version = 11 : i64} {
  func.func @_copy_kernel(%arg0: i32, %arg1: memref<2x1024xf32, #tpu.memory_space<vmem>>, %arg2: memref<2x1024xf32, #tpu.memory_space<vmem>>) attributes {dimension_semantics = [#tpu.dimension_semantics<parallel>], iteration_bounds = array<i64: 1>, scalar_prefetch = 0 : i64, scratch_operands = 0 : i64, tpu.core_type = #tpu.core_type<tc>, window_params = [{transform_indices = @transform_0, window_bounds = array<i64: 2, 1024>}, {transform_indices = @transform_1, window_bounds = array<i64: 2, 1024>}]} {
    %c0 = arith.constant 0 : index
    %c0_0 = arith.constant 0 : index
    %0 = vector.load %arg1[%c0, %c0_0] : memref<2x1024xf32, #tpu.memory_space<vmem>>, vector<2x1024xf32>
    %c0_1 = arith.constant 0 : index
    %c0_2 = arith.constant 0 : index
    %1 = vector.load %arg2[%c0_1, %c0_2] : memref<2x1024xf32, #tpu.memory_space<vmem>>, vector<2x1024xf32>
    tpu.vector_store %arg2[%c0_1, %c0_2], %0 {strides = array<i32>} : memref<2x1024xf32, #tpu.memory_space<vmem>>, vector<2x1024xf32>,
    return
  }
  func.func @transform_0(%arg0: i32) -> (i32, i32) {
    %c0_i32 = arith.constant 0 : i32
    %c0_i32_0 = arith.constant 0 : i32
    return %arg0, %c0_i32 : i32, i32
  }
  func.func @transform_1(%arg0: i32) -> (i32, i32) {
    %c0_i32 = arith.constant 0 : i32
    %c0_i32_0 = arith.constant 0 : i32
    return %arg0, %c0_i32 : i32, i32
  }
}

</mosaic_0001>

<bundles_post_ra>
// kernel: tpu_custom_call.1
= control target key start
LH: loop header
LB: loop body
LE: loop exit
PB: predicated region body
PF: predicated region fallthrough
CT: control target
= control target key end

     0   :  { %6 = vsyncpa [#allocation3], 0  ;;  %s126_s0 = inlined_call_operand.hbm [shape: f32[2,1024], index: 0, kind: input, shape index: {}]   ;;  %s127_s1 = inlined_call_operand.hbm [shape: f32[2,1024], index: 1, kind: output, shape index: {}]  }
   0x1   :  { %7 = vsyncpa [#allocation4], 0  ;;  %s90_s6 = smov [#allocation2]   ;;  %s42_s10 = scalar_lea.hbm %s126_s0, 256 }
   0x2   :  { %s14_s7 = sshll.u32 %s90_s6, 4  ;;  %p43_p0 = scmp.ne.s32.totalorder %s126_s0, %s42_s10  ;;  %s15_s7 = int_to_ptr.vmem [resolvable:$true] %s14_s7 }
   0x3   :  { %p46_p1 = scmp.lt.u32.totalorder %s42_s10, %s126_s0 }
   0x5   :  { %p48_p2 = pnand %p46_p1, %p43_p0 }
   0x7   :  { %51 = shalt.err (!%p48_p2)
}
   0x8   :  { %s52_s15 = scalar_lea.vmem %s15_s7, 256  ;;  %p57_p4 = scmp.lt.s32.totalorder %s15_s7, %s15_s7 }
   0x9   :  { %p53_p3 = scmp.ne.s32.totalorder %s15_s7, %s52_s15  ;;  %p58_p5 = scmp.lt.s32.totalorder %s52_s15, %s52_s15 }
   0xb   :  { %p59_p6 = por %p58_p5, %p57_p4 }
   0xd   :  { %p60_p7 = pnand %p59_p6, %p53_p3 }
   0xf   :  { %63 = shalt.err (!%p60_p7)
}
  0x10   :  { %17 = dma.hbm_to_vmem [thread:$0]  %s126_s0, 256, %s15_s7, [#allocation3]  }
  0x11   :  { %86 = dma.done.wait [#allocation3], 256  }
  0x12   :  { %87 = vsyncadd [#allocation3], 4294967040  ;;  %s91_s18 = smov [#allocation5]   ;;  %v21_v0 = vld [vmem:[#allocation2] sm:$0xff]  ;;  %v22_v1 = vld [vmem:[#allocation2 + $0x8] sm:$0xff] }
  0x13   :  { %s31_s19 = sshll.u32 %s91_s18, 4  ;;  %23 = vst [vmem:[#allocation5] sm:$0xff] %v21_v0  ;;  %24 = vst [vmem:[#allocation5 + $0x8] sm:$0xff] %v22_v1  ;;  %s32_s19 = int_to_ptr.vmem [resolvable:$true] %s31_s19 }
  0x14   :  { %s64_s20 = scalar_lea.vmem %s32_s19, 256  ;;  %p69_p9 = scmp.lt.s32.totalorder %s32_s19, %s32_s19 }
  0x15   :  { %p65_p8 = scmp.ne.s32.totalorder %s32_s19, %s64_s20  ;;  %p70_p10 = scmp.lt.s32.totalorder %s64_s20, %s64_s20 }
  0x17   :  { %p71_p11 = por %p70_p10, %p69_p9 }
  0x19   :  { %p72_p12 = pnand %p71_p11, %p65_p8 }
  0x1b   :  { %75 = shalt.err (!%p72_p12)
}
  0x1c   :  { %s76_s0 = scalar_lea.hbm %s127_s1, 256 }
  0x1d   :  { %p77_p13 = scmp.ne.s32.totalorder %s127_s1, %s76_s0  ;;  %p80_p0 = scmp.lt.u32.totalorder %s76_s0, %s127_s1 }
  0x1f   :  { %p82_p1 = pnand %p80_p0, %p77_p13 }
  0x21   :  { %85 = shalt.err (!%p82_p1)
}
  0x22   :  { %34 = dma.vmem_to_hbm [thread:$0]  %s32_s19, 256, %s127_s1, [#allocation4]  }
  0x23   :  { %88 = dma.done.wait [#allocation4], 256  }
  0x24   :  { %89 = vsyncadd [#allocation4], 4294967040 }
  0x25   :  { %38 = vsyncpa [#allocation3], 1 }
  0x26   :  { %39 = vsyncpa [#allocation4], 1 }

</bundles_post_ra>
